<compile_context>
chip_gen: v6e
topology: v6e:2x2x1
jax: 0.10.0
libtpu: 0.0.40
codegen_flags: <defaults>
</compile_context>

<pallas_src>
import functools

import jax
import jax.numpy as jnp
from jax.experimental import pallas as pl
from jax.experimental.pallas import tpu as pltpu


def _round_up(x, m):
    return ((x + m - 1) // m) * m


def _squeeze_trailing(x):
    # torch .squeeze(-1).squeeze(-1) for (B, D, 1, 1)-style inputs.
    while x.ndim > 2 and x.shape[-1] == 1:
        x = x.reshape(x.shape[:-1])
    return x


def _consist_kernel(p1n_ref, p2n_ref, k1_ref, k2_ref, ce_out_ref, sp_out_ref,
                    ce_acc, sp_acc, *, n_query):
    c = pl.program_id(0)          # core-split axis ("parallel": 2 TCs on v7x)
    j = pl.program_id(1)          # batch-block axis ("arbitrary": accumulation)
    nbj = pl.num_programs(1)

    @pl.when(j == 0)
    def _():
        ce_acc[...] = jnp.zeros_like(ce_acc)
        sp_acc[...] = jnp.zeros_like(sp_acc)

    # Supports are pre-normalized and pre-scaled by 1/tau in the wrapper
    # (hoisted out of the grid loop); constant index_map keeps them resident.
    p1n = p1n_ref[...]                       # (NS, D) f32
    p2n = p2n_ref[...]                       # (NS, D) f32
    k1 = k1_ref[...].astype(jnp.float32)     # (blk, D) query tile
    k2 = k2_ref[...].astype(jnp.float32)

    def l2norm(x):
        # F.normalize: x / max(||x||, 1e-12) == x * rsqrt(max(||x||^2, 1e-24))
        ss = jnp.sum(x * x, axis=-1, keepdims=True)
        return x * jax.lax.rsqrt(jnp.maximum(ss, 1e-24))

    q1 = l2norm(k1)                          # (blk, D)
    q2 = l2norm(k2)

    # Lane-dense class layout: (NS, blk) = supports @ queries.T (already /tau).
    dn = (((1,), (1,)), ((), ()))
    logits1 = jax.lax.dot_general(p1n, q1, dn, preferred_element_type=jnp.float32)
    logits2 = jax.lax.dot_general(p2n, q2, dn, preferred_element_type=jnp.float32)

    # Anchor branch: log-probs via log-sum-exp; sharpen(softmax) == e^4/sum(e^4)
    # (the softmax normalization cancels inside sharpen, saving a divide).
    m1 = jnp.max(logits1, axis=0, keepdims=True)            # (1, blk)
    sh1 = logits1 - m1
    e1 = jnp.exp(sh1)
    log_probs = sh1 - jnp.log(jnp.sum(e1, axis=0, keepdims=True))   # (NS, blk)
    e1q = e1 * e1
    e1q = e1q * e1q                                          # e1^4 (no pow())
    sharp_probs = e1q / jnp.sum(e1q, axis=0, keepdims=True)  # sharpen(probs)

    # Target branch (forward-only; torch.no_grad irrelevant): same trick.
    m2 = jnp.max(logits2, axis=0, keepdims=True)
    e2 = jnp.exp(logits2 - m2)
    e2q = e2 * e2
    e2q = e2q * e2q
    targets = e2q / jnp.sum(e2q, axis=0, keepdims=True)
    targets = jnp.where(targets < 1e-4, 0.0, targets)        # targets[t<1e-4] *= 0
    # log_probs is finite (LSE form), so no extra >0 guard on the CE product.

    blk = k1_ref.shape[0]
    col = (c * nbj + j) * blk + jax.lax.broadcasted_iota(jnp.int32, (1, blk), 1)
    valid = (col < n_query).astype(jnp.float32)              # mask padded rows

    # log(probs ** (-t)) == -t * log(probs); accumulate +t*log(p), negate once.
    ce_acc[...] += (targets * log_probs) * valid
    sp_acc[...] += sharp_probs * valid

    @pl.when(j == nbj - 1)
    def _():
        ns = sp_acc.shape[0]
        ce_out_ref[...] = (-jnp.sum(ce_acc[...])).reshape(1, 1, 1)
        sp_out_ref[...] = jnp.sum(sp_acc[...], axis=1,
                                  keepdims=True).reshape(1, ns, 1)


def criterion_consist_forward(p1, p2, k1, k2, *, tau=0.1, block_rows=512,
                              core_splits=2):
    """Forward pass of criterion_consist, fused in one Pallas kernel."""
    p1 = _squeeze_trailing(p1)
    p2 = _squeeze_trailing(p2)
    k1 = _squeeze_trailing(k1)
    k2 = _squeeze_trailing(k2)

    ns, d = p1.shape
    assert ns == 10, "labels = one_hot(arange(10), 10): supports must have 10 rows"
    assert p2.shape == (ns, d)
    bq = k1.shape[0]
    assert k1.shape == k2.shape == (bq, d)

    # Hoisted support normalization (F.normalize) with the 1/tau scale folded
    # in so the kernel matmul produces logits directly.
    def normalize(x):
        x = x.astype(jnp.float32)
        n = jnp.sqrt(jnp.sum(x * x, axis=-1, keepdims=True))
        return x / jnp.maximum(n, 1e-12)

    p1n = normalize(p1) * (1.0 / tau)
    p2n = normalize(p2) * (1.0 / tau)

    # Row-block size: sublane aligned, balanced over the core splits, and
    # capped so (2 query inputs x 2 pipeline buffers) stay <= ~8 MiB — fits the
    # v5e 16 MiB scoped-VMEM default and leaves headroom on v7x's 64 MiB VMEM.
    itemsize = jnp.dtype(k1.dtype).itemsize
    vmem_cap_rows = max(8, (8 * 1024 * 1024) // (4 * d * itemsize))
    blk = min(block_rows, vmem_cap_rows, _round_up(pl.cdiv(bq, core_splits), 8))
    if blk >= 128:
        blk = (blk // 128) * 128          # lane-dense accumulator tiles
    blk = max(8, (blk // 8) * 8)

    bp = _round_up(bq, blk * core_splits)
    if bp != bq:
        pad = [(0, bp - bq), (0, 0)]
        k1 = jnp.pad(k1, pad)
        k2 = jnp.pad(k2, pad)
    nbj = bp // (blk * core_splits)
    grid = (core_splits, nbj)

    kernel = functools.partial(_consist_kernel, n_query=bq)

    ce_parts, sp_parts = pl.pallas_call(
        kernel,
        out_shape=(
            jax.ShapeDtypeStruct((core_splits, 1, 1), jnp.float32),
            jax.ShapeDtypeStruct((core_splits, ns, 1), jnp.float32),
        ),
        grid_spec=pltpu.PrefetchScalarGridSpec(
            num_scalar_prefetch=0,
            grid=grid,
            in_specs=[
                pl.BlockSpec((ns, d), lambda c, j: (0, 0)),   # supports: resident
                pl.BlockSpec((ns, d), lambda c, j: (0, 0)),
                pl.BlockSpec((blk, d), lambda c, j: (c * nbj + j, 0)),  # queries
                pl.BlockSpec((blk, d), lambda c, j: (c * nbj + j, 0)),
            ],
            out_specs=(
                pl.BlockSpec((1, 1, 1), lambda c, j: (c, 0, 0)),
                pl.BlockSpec((1, ns, 1), lambda c, j: (c, 0, 0)),
            ),
            scratch_shapes=[
                pltpu.VMEM((ns, blk), jnp.float32),   # sum_b targets*log(probs)
                pltpu.VMEM((ns, blk), jnp.float32),   # sum_b sharpen(probs)
            ],
        ),
        compiler_params=pltpu.CompilerParams(
            dimension_semantics=("parallel", "arbitrary"),
        ),
    )(p1n, p2n, k1, k2)

    # Tiny (10-element) cross-core combine + entropy regularizer.
    loss = jnp.sum(ce_parts) / bq
    avg = jnp.sum(sp_parts[:, :, 0], axis=0) / bq                   # (NS,)
    rloss = jnp.sum(jnp.where(avg > 0.0, avg * jnp.log(avg), 0.0))  # 0**0 -> log 1
    return loss + rloss


def _reference(p1, p2, k1, k2, tau=0.1):
    """Pure-JAX mirror of the PyTorch forward (single device)."""
    def sq(x):
        return x.reshape(x.shape[0], x.shape[1])

    p1, p2, k1, k2 = sq(p1), sq(p2), sq(k1), sq(k2)
    labels = jnp.eye(10, dtype=jnp.float32)      # one_hot(arange(10), 10)

    def normalize(x):
        n = jnp.sqrt(jnp.sum(x * x, axis=-1, keepdims=True))
        return x / jnp.maximum(n, 1e-12)

    def snn(q, s, lab):
        return jax.nn.softmax(normalize(q) @ normalize(s).T / tau, axis=1) @ lab

    def sharpen(p):
        sp = p ** (1.0 / 0.25)
        return sp / jnp.sum(sp, axis=1, keepdims=True)

    probs = snn(k1, p1, labels)
    targets = sharpen(snn(k2, p2, labels))
    targets = jnp.where(targets < 1e-4, 0.0, targets)

    loss = jnp.mean(jnp.sum(jnp.log(probs ** (-targets)), axis=1))
    avg_probs = jnp.mean(sharpen(probs), axis=0)
    rloss = -jnp.sum(jnp.log(avg_probs ** (-avg_probs)))
    return loss + rloss


if __name__ == "__main__":
    key = jax.random.PRNGKey(0)
    kp1, kp2, kk1, kk2 = jax.random.split(key, 4)

    # Shapes implied by forward(): supports have 10 rows (the fixed one-hot
    # labels of classes 0..9); queries use a small batch.
    ns, d, bq = 10, 32, 16
    p1 = jax.random.normal(kp1, (ns, d, 1, 1), dtype=jnp.float32)
    p2 = jax.random.normal(kp2, (ns, d, 1, 1), dtype=jnp.float32)
    k1 = jax.random.normal(kk1, (bq, d, 1, 1), dtype=jnp.float32)
    k2 = jax.random.normal(kk2, (bq, d, 1, 1), dtype=jnp.float32)

    out = criterion_consist_forward(p1, p2, k1, k2)
    out = jax.block_until_ready(out)

    ref = _reference(p1, p2, k1, k2)
    assert jnp.allclose(out, ref, rtol=1e-3, atol=1e-3), (out, ref)

    print("KERNEL_OK")
</pallas_src>

<mosaic_0001>
module attributes {stable_mosaic.version = 11 : i64} {
  func.func @_consist_kernel(%arg0: i32, %arg1: i32, %arg2: memref<10x32xf32, #tpu.memory_space<vmem>>, %arg3: memref<10x32xf32, #tpu.memory_space<vmem>>, %arg4: memref<8x32xf32, #tpu.memory_space<vmem>>, %arg5: memref<8x32xf32, #tpu.memory_space<vmem>>, %arg6: memref<1x1x1xf32, #tpu.memory_space<vmem>>, %arg7: memref<1x10x1xf32, #tpu.memory_space<vmem>>, %arg8: memref<10x8xf32, #tpu.memory_space<vmem>>, %arg9: memref<10x8xf32, #tpu.memory_space<vmem>>) attributes {dimension_semantics = [#tpu.dimension_semantics<parallel>, #tpu.dimension_semantics<arbitrary>], iteration_bounds = array<i64: 2, 1>, scalar_prefetch = 0 : i64, scratch_operands = 2 : i64, tpu.core_type = #tpu.core_type<tc>, window_params = [{pipeline_mode = #tpu.pipeline_mode<synchronous>, transform_indices = @transform_0, window_bounds = array<i64: 10, 32>}, {pipeline_mode = #tpu.pipeline_mode<synchronous>, transform_indices = @transform_1, window_bounds = array<i64: 10, 32>}, {transform_indices = @transform_2, window_bounds = array<i64: 8, 32>}, {transform_indices = @transform_3, window_bounds = array<i64: 8, 32>}, {transform_indices = @transform_4, window_bounds = array<i64: 1, 1, 1>}, {transform_indices = @transform_5, window_bounds = array<i64: 1, 10, 1>}]} {
    %c0_i32 = arith.constant 0 : i32
    %0 = arith.cmpi eq, %arg1, %c0_i32 : i32
    %1 = arith.extui %0 : i1 to i32
    %c0_i32_0 = arith.constant 0 : i32
    %2 = arith.cmpi ne, %1, %c0_i32_0 : i32
    scf.if %2 {
      %cst_30 = arith.constant 0.000000e+00 : f32
      %80 = vector.broadcast %cst_30 : f32 to vector<10x8xf32>
      %c0_31 = arith.constant 0 : index
      %c0_32 = arith.constant 0 : index
      %81 = vector.load %arg8[%c0_31, %c0_32] : memref<10x8xf32, #tpu.memory_space<vmem>>, vector<10x8xf32>
      tpu.vector_store %arg8[%c0_31, %c0_32], %80 {strides = array<i32>} : memref<10x8xf32, #tpu.memory_space<vmem>>, vector<10x8xf32>,
      %cst_33 = arith.constant 0.000000e+00 : f32
      %82 = vector.broadcast %cst_33 : f32 to vector<10x8xf32>
      %c0_34 = arith.constant 0 : index
      %c0_35 = arith.constant 0 : index
      %83 = vector.load %arg9[%c0_34, %c0_35] : memref<10x8xf32, #tpu.memory_space<vmem>>, vector<10x8xf32>
      tpu.vector_store %arg9[%c0_34, %c0_35], %82 {strides = array<i32>} : memref<10x8xf32, #tpu.memory_space<vmem>>, vector<10x8xf32>,
    } else {
    }
    %c0 = arith.constant 0 : index
    %c0_1 = arith.constant 0 : index
    %3 = vector.load %arg2[%c0, %c0_1] : memref<10x32xf32, #tpu.memory_space<vmem>>, vector<10x32xf32>
    %c0_2 = arith.constant 0 : index
    %c0_3 = arith.constant 0 : index
    %4 = vector.load %arg3[%c0_2, %c0_3] : memref<10x32xf32, #tpu.memory_space<vmem>>, vector<10x32xf32>
    %c0_4 = arith.constant 0 : index
    %c0_5 = arith.constant 0 : index
    %5 = vector.load %arg4[%c0_4, %c0_5] : memref<8x32xf32, #tpu.memory_space<vmem>>, vector<8x32xf32>
    %c0_6 = arith.constant 0 : index
    %c0_7 = arith.constant 0 : index
    %6 = vector.load %arg5[%c0_6, %c0_7] : memref<8x32xf32, #tpu.memory_space<vmem>>, vector<8x32xf32>
    %7 = arith.mulf %5, %5 : vector<8x32xf32>
    %cst = arith.constant dense<0.000000e+00> : vector<8xf32>
    %8 = vector.multi_reduction <add>, %7, %cst [1] : vector<8x32xf32> to vector<8xf32>
    %9 = vector.shape_cast %8 : vector<8xf32> to vector<8x1xf32>
    %cst_8 = arith.constant 1.000000e-24 : f32
    %10 = vector.broadcast %cst_8 : f32 to vector<8x1xf32>
    %11 = arith.maximumf %9, %10 : vector<8x1xf32>
    %12 = math.rsqrt %11 : vector<8x1xf32>
    %13 = vector.broadcast %12 : vector<8x1xf32> to vector<8x32xf32>
    %14 = arith.mulf %5, %13 : vector<8x32xf32>
    %15 = arith.mulf %6, %6 : vector<8x32xf32>
    %cst_9 = arith.constant dense<0.000000e+00> : vector<8xf32>
    %16 = vector.multi_reduction <add>, %15, %cst_9 [1] : vector<8x32xf32> to vector<8xf32>
    %17 = vector.shape_cast %16 : vector<8xf32> to vector<8x1xf32>
    %cst_10 = arith.constant 1.000000e-24 : f32
    %18 = vector.broadcast %cst_10 : f32 to vector<8x1xf32>
    %19 = arith.maximumf %17, %18 : vector<8x1xf32>
    %20 = math.rsqrt %19 : vector<8x1xf32>
    %21 = vector.broadcast %20 : vector<8x1xf32> to vector<8x32xf32>
    %22 = arith.mulf %6, %21 : vector<8x32xf32>
    %cst_11 = arith.constant dense<0.000000e+00> : vector<10x8xf32>
    %23 = tpu.matmul %3, %14, %cst_11 {dimension_numbers = #tpu.dot_dimension_numbers<[1], [1], [0], [0], [0, 0, 1, 0], [], []>} : vector<10x32xf32>, vector<8x32xf32>, vector<10x8xf32> -> vector<10x8xf32>
    %cst_12 = arith.constant dense<0.000000e+00> : vector<10x8xf32>
    %24 = tpu.matmul %4, %22, %cst_12 {dimension_numbers = #tpu.dot_dimension_numbers<[1], [1], [0], [0], [0, 0, 1, 0], [], []>} : vector<10x32xf32>, vector<8x32xf32>, vector<10x8xf32> -> vector<10x8xf32>
    %cst_13 = arith.constant dense<0xFF800000> : vector<8xf32>
    %25 = vector.multi_reduction <maximumf>, %23, %cst_13 [0] : vector<10x8xf32> to vector<8xf32>
    %26 = vector.shape_cast %25 : vector<8xf32> to vector<1x8xf32>
    %27 = vector.broadcast %26 : vector<1x8xf32> to vector<10x8xf32>
    %28 = arith.subf %23, %27 : vector<10x8xf32>
    %29 = math.exp %28 : vector<10x8xf32>
    %cst_14 = arith.constant dense<0.000000e+00> : vector<8xf32>
    %30 = vector.multi_reduction <add>, %29, %cst_14 [0] : vector<10x8xf32> to vector<8xf32>
    %31 = vector.shape_cast %30 : vector<8xf32> to vector<1x8xf32>
    %32 = math.log %31 : vector<1x8xf32>
    %33 = vector.broadcast %32 : vector<1x8xf32> to vector<10x8xf32>
    %34 = arith.subf %28, %33 : vector<10x8xf32>
    %35 = arith.mulf %29, %29 : vector<10x8xf32>
    %36 = arith.mulf %35, %35 : vector<10x8xf32>
    %cst_15 = arith.constant dense<0.000000e+00> : vector<8xf32>
    %37 = vector.multi_reduction <add>, %36, %cst_15 [0] : vector<10x8xf32> to vector<8xf32>
    %38 = vector.shape_cast %37 : vector<8xf32> to vector<1x8xf32>
    %39 = vector.broadcast %38 : vector<1x8xf32> to vector<10x8xf32>
    %40 = arith.divf %36, %39 : vector<10x8xf32>
    %cst_16 = arith.constant dense<0xFF800000> : vector<8xf32>
    %41 = vector.multi_reduction <maximumf>, %24, %cst_16 [0] : vector<10x8xf32> to vector<8xf32>
    %42 = vector.shape_cast %41 : vector<8xf32> to vector<1x8xf32>
    %43 = vector.broadcast %42 : vector<1x8xf32> to vector<10x8xf32>
    %44 = arith.subf %24, %43 : vector<10x8xf32>
    %45 = math.exp %44 : vector<10x8xf32>
    %46 = arith.mulf %45, %45 : vector<10x8xf32>
    %47 = arith.mulf %46, %46 : vector<10x8xf32>
    %cst_17 = arith.constant dense<0.000000e+00> : vector<8xf32>
    %48 = vector.multi_reduction <add>, %47, %cst_17 [0] : vector<10x8xf32> to vector<8xf32>
    %49 = vector.shape_cast %48 : vector<8xf32> to vector<1x8xf32>
    %50 = vector.broadcast %49 : vector<1x8xf32> to vector<10x8xf32>
    %51 = arith.divf %47, %50 : vector<10x8xf32>
    %cst_18 = arith.constant 9.99999974E-5 : f32
    %52 = vector.broadcast %cst_18 : f32 to vector<10x8xf32>
    %53 = arith.cmpf olt, %51, %52 : vector<10x8xf32>
    %cst_19 = arith.constant 0.000000e+00 : f32
    %54 = vector.broadcast %cst_19 : f32 to vector<10x8xf32>
    %55 = arith.select %53, %54, %51 : vector<10x8xi1>, vector<10x8xf32>
    %c1_i32 = arith.constant 1 : i32
    %56 = arith.muli %arg0, %c1_i32 : i32
    %57 = arith.addi %56, %arg1 : i32
    %c8_i32 = arith.constant 8 : i32
    %58 = arith.muli %57, %c8_i32 : i32
    %59 = tpu.iota {dimensions = array<i32: 1>} : vector<1x8xi32>
    %60 = vector.broadcast %58 : i32 to vector<1x8xi32>
    %61 = arith.addi %60, %59 : vector<1x8xi32>
    %c16_i32 = arith.constant 16 : i32
    %62 = vector.broadcast %c16_i32 : i32 to vector<1x8xi32>
    %63 = arith.cmpi slt, %61, %62 : vector<1x8xi32>
    %64 = arith.extui %63 : vector<1x8xi1> to vector<1x8xi32>
    %65 = arith.sitofp %64 : vector<1x8xi32> to vector<1x8xf32>
    %c0_20 = arith.constant 0 : index
    %c0_21 = arith.constant 0 : index
    %66 = vector.load %arg8[%c0_20, %c0_21] : memref<10x8xf32, #tpu.memory_space<vmem>>, vector<10x8xf32>
    %67 = arith.mulf %55, %34 : vector<10x8xf32>
    %68 = vector.broadcast %65 : vector<1x8xf32> to vector<10x8xf32>
    %69 = arith.mulf %67, %68 : vector<10x8xf32>
    %70 = arith.addf %66, %69 : vector<10x8xf32>
    %c0_22 = arith.constant 0 : index
    %c0_23 = arith.constant 0 : index
    %71 = vector.load %arg8[%c0_22, %c0_23] : memref<10x8xf32, #tpu.memory_space<vmem>>, vector<10x8xf32>
    tpu.vector_store %arg8[%c0_22, %c0_23], %70 {strides = array<i32>} : memref<10x8xf32, #tpu.memory_space<vmem>>, vector<10x8xf32>,
    %c0_24 = arith.constant 0 : index
    %c0_25 = arith.constant 0 : index
    %72 = vector.load %arg9[%c0_24, %c0_25] : memref<10x8xf32, #tpu.memory_space<vmem>>, vector<10x8xf32>
    %73 = vector.broadcast %65 : vector<1x8xf32> to vector<10x8xf32>
    %74 = arith.mulf %40, %73 : vector<10x8xf32>
    %75 = arith.addf %72, %74 : vector<10x8xf32>
    %c0_26 = arith.constant 0 : index
    %c0_27 = arith.constant 0 : index
    %76 = vector.load %arg9[%c0_26, %c0_27] : memref<10x8xf32, #tpu.memory_space<vmem>>, vector<10x8xf32>
    tpu.vector_store %arg9[%c0_26, %c0_27], %75 {strides = array<i32>} : memref<10x8xf32, #tpu.memory_space<vmem>>, vector<10x8xf32>,
    %c0_i32_28 = arith.constant 0 : i32
    %77 = arith.cmpi eq, %arg1, %c0_i32_28 : i32
    %78 = arith.extui %77 : i1 to i32
    %c0_i32_29 = arith.constant 0 : i32
    %79 = arith.cmpi ne, %78, %c0_i32_29 : i32
    scf.if %79 {
      %c0_30 = arith.constant 0 : index
      %c0_31 = arith.constant 0 : index
      %80 = vector.load %arg8[%c0_30, %c0_31] : memref<10x8xf32, #tpu.memory_space<vmem>>, vector<10x8xf32>
      %81 = vector.shape_cast %80 : vector<10x8xf32> to vector<1x10x8xf32>
      %cst_32 = arith.constant dense<0.000000e+00> : vector<1xf32>
      %82 = vector.multi_reduction <add>, %81, %cst_32 [1, 2] : vector<1x10x8xf32> to vector<1xf32>
      %83 = vector.shape_cast %82 : vector<1xf32> to vector<1x1x1xf32>
      %84 = vector.extract %83[0, 0, 0] : f32 from vector<1x1x1xf32>
      %cst_33 = arith.constant 0.000000e+00 : f32
      %85 = arith.subf %cst_33, %84 : f32
      %86 = vector.broadcast %85 : f32 to vector<1x1x1xf32>
      %c0_34 = arith.constant 0 : index
      %c0_35 = arith.constant 0 : index
      %c0_36 = arith.constant 0 : index
      %87 = vector.load %arg6[%c0_34, %c0_35, %c0_36] : memref<1x1x1xf32, #tpu.memory_space<vmem>>, vector<1x1x1xf32>
      tpu.vector_store %arg6[%c0_34, %c0_35, %c0_36], %86 {strides = array<i32>} : memref<1x1x1xf32, #tpu.memory_space<vmem>>, vector<1x1x1xf32>,
      %c0_37 = arith.constant 0 : index
      %c0_38 = arith.constant 0 : index
      %88 = vector.load %arg9[%c0_37, %c0_38] : memref<10x8xf32, #tpu.memory_space<vmem>>, vector<10x8xf32>
      %cst_39 = arith.constant dense<0.000000e+00> : vector<10xf32>
      %89 = vector.multi_reduction <add>, %88, %cst_39 [1] : vector<10x8xf32> to vector<10xf32>
      %90 = vector.shape_cast %89 : vector<10xf32> to vector<10x1xf32>
      %91 = vector.shape_cast %90 : vector<10x1xf32> to vector<1x10x1xf32>
      %c0_40 = arith.constant 0 : index
      %c0_41 = arith.constant 0 : index
      %c0_42 = arith.constant 0 : index
      %92 = vector.load %arg7[%c0_40, %c0_41, %c0_42] : memref<1x10x1xf32, #tpu.memory_space<vmem>>, vector<1x10x1xf32>
      tpu.vector_store %arg7[%c0_40, %c0_41, %c0_42], %91 {strides = array<i32>} : memref<1x10x1xf32, #tpu.memory_space<vmem>>, vector<1x10x1xf32>,
    } else {
    }
    return
  }
  func.func @transform_0(%arg0: i32, %arg1: i32) -> (i32, i32) {
    %c0_i32 = arith.constant 0 : i32
    %c0_i32_0 = arith.constant 0 : i32
    %c0_i32_1 = arith.constant 0 : i32
    return %c0_i32, %c0_i32_0 : i32, i32
  }
  func.func @transform_1(%arg0: i32, %arg1: i32) -> (i32, i32) {
    %c0_i32 = arith.constant 0 : i32
    %c0_i32_0 = arith.constant 0 : i32
    %c0_i32_1 = arith.constant 0 : i32
    return %c0_i32, %c0_i32_0 : i32, i32
  }
  func.func @transform_2(%arg0: i32, %arg1: i32) -> (i32, i32) {
    %c1_i32 = arith.constant 1 : i32
    %0 = arith.muli %arg0, %c1_i32 : i32
    %1 = arith.addi %0, %arg1 : i32
    %c0_i32 = arith.constant 0 : i32
    %c0_i32_0 = arith.constant 0 : i32
    return %1, %c0_i32 : i32, i32
  }
  func.func @transform_3(%arg0: i32, %arg1: i32) -> (i32, i32) {
    %c1_i32 = arith.constant 1 : i32
    %0 = arith.muli %arg0, %c1_i32 : i32
    %1 = arith.addi %0, %arg1 : i32
    %c0_i32 = arith.constant 0 : i32
    %c0_i32_0 = arith.constant 0 : i32
    return %1, %c0_i32 : i32, i32
  }
  func.func @transform_4(%arg0: i32, %arg1: i32) -> (i32, i32, i32) {
    %c0_i32 = arith.constant 0 : i32
    %c0_i32_0 = arith.constant 0 : i32
    %c0_i32_1 = arith.constant 0 : i32
    return %arg0, %c0_i32, %c0_i32_0 : i32, i32, i32
  }
  func.func @transform_5(%arg0: i32, %arg1: i32) -> (i32, i32, i32) {
    %c0_i32 = arith.constant 0 : i32
    %c0_i32_0 = arith.constant 0 : i32
    %c0_i32_1 = arith.constant 0 : i32
    return %arg0, %c0_i32, %c0_i32_0 : i32, i32, i32
  }
}

</mosaic_0001>

<bundles_post_ra>
// kernel: tpu_custom_call.1
= control target key start
LH: loop header
LB: loop body
LE: loop exit
PB: predicated region body
PF: predicated region fallthrough
CT: control target
= control target key end

     0   :  { %s1381_s0 = inlined_call_operand.hbm [shape: f32[10,32], index: 0, kind: input, shape index: {}]   ;;  %s1382_s1 = inlined_call_operand.hbm [shape: f32[10,32], index: 1, kind: input, shape index: {}]   ;;  %s1383_s2 = inlined_call_operand.hbm [shape: f32[16,32], index: 2, kind: input, shape index: {}]   ;;  %s1384_s3 = inlined_call_operand.hbm [shape: f32[16,32], index: 3, kind: input, shape index: {}]   ;;  %s1385_s4 = inlined_call_operand.vmem [shape: f32[2,1,1], index: 4, kind: output, shape index: {0}]   ;;  %s1386_s5 = inlined_call_operand.vmem [shape: f32[2,10,1], index: 5, kind: output, shape index: {1}]  }
   0x1   :  { %1390 = sst [smem:[#allocation13_spill]] %s1381_s0 }
   0x2   :  { %11 = vsyncpa [#allocation5], 0 }
   0x3   :  { %12 = vsyncpa [#allocation7], 0  ;;  %s1166_s18 = smov 0   ;;  %s1168_s19 = smov 0  }
   0x4   :  { %s1170_s20 = smov 0   ;;  %s1172_s21 = smov 0  }
   0x5   :  { %s1174_s22 = smov 0   ;;  %s1176_s23 = smov 0  }
   0x6 LB: > { %s1387_s24 = sadd.s32 4294967295, %s1127_s23   ;;  %p94_p0 = scmp.ne.s32.totalorder %s1111_s19, %s1107_s18  ;;  %s1127_s23 = sphi %s1176_s23, %s18_s23   ;;  %s1123_s22 = sphi %s1174_s22, %s1404_s22   ;;  %s1119_s21 = sphi %s1172_s21, %s1403_s21   ;;  %s1115_s20 = sphi %s1170_s20, %s1402_s20   ;;  %s1111_s19 = sphi %s1168_s19, %s1401_s19   ;;  %s1107_s18 = sphi %s1166_s18, %s1400_s18  }
   0x7   : > { %p1198_p1 = scmp.eq.s32.totalorder %s1387_s24, 0  ;;  %p815_p2 = scmp.ge.s32.totalorder %s1127_s23, 1 }
   0x8   : > { %p185_p3 = scmp.lt.s32.totalorder %s1127_s23, 3  ;;  %s1129_s28 = smov [#allocation4]  }
   0x9   : > { %p1206_p4 = por %p1198_p1, %p94_p0  ;;  %s197_s29 = sshll.u32 %s1129_s28, 4  ;;  %s198_s29 = int_to_ptr.vmem [resolvable:$true] %s197_s29 }
   0xa   : > { %p1210_p5 = pnand %p815_p2, %p185_p3  ;;  %s30_s6 = sadd.s32 1, %s1123_s22 }
   0xb   : > { %s972_s7 = scalar_lea.vmem %s198_s29, 256  ;;  %p980_p12 = scmp.lt.s32.totalorder %s198_s29, %s198_s29 }
   0xc   : > { %p871_p6 = pneg %p1210_p5  ;;  %p973_p9 = scmp.ne.s32.totalorder %s198_s29, %s972_s7 }
   0xd   : > { %p981_p13 = scmp.lt.s32.totalorder %s972_s7, %s972_s7 }
   0xe   : > { %p1218_p7 = pnand %p871_p6, %p1198_p1 }
   0xf   : > { %p982_p0 = por %p981_p13, %p980_p12 }
  0x10   : > { %p963_p8 = pneg %p1218_p7 }
  0x12   : > { %p975_p10 = pnand %p973_p9, %p963_p8 }
  0x14   : > { %p976_p11 = pneg %p975_p10 }
  0x16   : > { %p983_p2 = pnand %p982_p0, %p976_p11 }
  0x18   : > { %986 = shalt.err (!%p983_p2)
}
  0x19   : > { %s1388_s8 = smov 128   ;;  %s1389_s9 = smov 8  }
  0x1a   : > { %s1395_s0 = sld [smem:[#allocation13_spill]]  ;;  %p32_p3 = scmp.ge.s32.totalorder %s30_s6, 2 }
  0x1b   : > { %s81_s12 = sadd.s32 1, %s1115_s20  ;;  %p88_p6 = scmp.ne.s32.totalorder %s1115_s20, %s1111_s19 }
  0x1c   : > { %p89_p9 = scmp.eq.s32.totalorder %s1127_s23, 0  ;;  %s1406_s6 = smov (%p32_p3, %s30_s6), 0 }
  0x1d   : > { %p887_p11 = scmp.lt.s32.totalorder %s1127_s23, 2  ;;  %s78_s13 = ssub.s32 %s1123_s22, %s1406_s6 }
  0x1e   : > { %p90_p10 = por %p89_p9, %p88_p6  ;;  %s224_s14 = sand.u32 1, %s1127_s23  }
  0x1f   : > { %p79_p12 = scmp.eq.s32.totalorder %s78_s13, 0  ;;  %s226_s15 = sand.u32 1, %s1115_s20  }
  0x20   : > { %874 = dma.hbm_to_vmem [thread:$0]  (!%p1218_p7), %s1395_s0, 256, %s198_s29, [#allocation5], %s1388_s8, %s1388_s8, %s1389_s9  }
  0x21   : > { %s820_s16 = sshll.u32 %s1123_s22, 7  ;;  %s1251_s18 = sshll.u32 %s226_s15, 3 }
  0x22   : > { %s1249_s17 = scalar_select %p79_p12, %s1115_s20, %s81_s12  }
  0x23   : > { %s234_s7 = scalar_lea.hbm %s1383_s2, %s820_s16  ;;  %p1256_p13 = pnand %p887_p11, %p90_p10 }
  0x24   : > { %s228_s11 = scalar_lea.vmem [#allocation8], %s1251_s18  ;;  %s1261_s13 = scalar_lea.sflag [#allocation5], %s224_s14 }
  0x25   : > { %s236_s24 = sshll.u32 %s228_s11, 4  ;;  %p989_p0 = pneg %p1256_p13  ;;  %s237_s24 = int_to_ptr.vmem [resolvable:$true] %s236_s24 }
  0x26   : > { %s1000_s12 = scalar_lea.vmem %s237_s24, 128  ;;  %s1132_s15 = smov [#allocation8]  }
  0x27   : > { %p1001_p2 = scmp.ne.s32.totalorder %s237_s24, %s1000_s12  ;;  %s1005_s28 = sshll.u32 %s1132_s15, 4  ;;  %s1006_s28 = int_to_ptr.vmem [resolvable:$false] %s1005_s28 }
  0x28   : > { %s1007_s29 = scalar_lea.vmem %s1006_s28, 256  ;;  %p1008_p9 = scmp.lt.s32.totalorder %s237_s24, %s1006_s28 }
  0x29   : > { %p1003_p3 = pnand %p1001_p2, %p989_p0  ;;  %p1009_p10 = scmp.lt.s32.totalorder %s1007_s29, %s1000_s12 }
  0x2b   : > { %p1004_p6 = pneg %p1003_p3  ;;  %p1010_p11 = por %p1009_p10, %p1008_p9 }
  0x2d   : > { %p1011_p12 = pnand %p1010_p11, %p1004_p6 }
  0x2f   : > { %1014 = shalt.err (!%p1011_p12)
}
  0x30   : > { %881 = dma.hbm_to_vmem [thread:$0]  (!%p1256_p13), %s234_s7, 128, %s237_s24, %s1261_s13  }
  0x31   : > { %s1133_s14 = smov [#allocation6]   ;;  %s253_s0 = scalar_lea.hbm %s1384_s3, %s820_s16 }
  0x32   : > { %s210_s11 = sshll.u32 %s1133_s14, 4  ;;  %s211_s11 = int_to_ptr.vmem [resolvable:$true] %s210_s11 }
  0x33   : > { %s1026_s15 = scalar_lea.vmem %s211_s11, 256  ;;  %p1034_p6 = scmp.lt.s32.totalorder %s211_s11, %s211_s11 }
  0x34   : > { %p1027_p2 = scmp.ne.s32.totalorder %s211_s11, %s1026_s15  ;;  %p1035_p10 = scmp.lt.s32.totalorder %s1026_s15, %s1026_s15 }
  0x36   : > { %p1029_p3 = pnand %p1027_p2, %p963_p8  ;;  %p1036_p11 = por %p1035_p10, %p1034_p6 }
  0x38   : > { %p1030_p9 = pneg %p1029_p3 }
  0x3a   : > { %p1037_p12 = pnand %p1036_p11, %p1030_p9 }
  0x3c   : > { %1040 = shalt.err (!%p1037_p12)
}
  0x3d   : > { %s1397_s24 = smov 8   ;;  %s1398_s7 = smov 128  }
  0x3e   : > { %877 = dma.hbm_to_vmem [thread:$0]  (!%p1218_p7), %s1382_s1, 256, %s211_s11, [#allocation7], %s1398_s7, %s1398_s7, %s1397_s24  }
  0x3f   : > { %s247_s8 = scalar_lea.vmem [#allocation9], %s1251_s18  ;;  %s1134_s29 = smov [#allocation9]  }
  0x40   : > { %s255_s9 = sshll.u32 %s247_s8, 4  ;;  %s1059_s30 = sshll.u32 %s1134_s29, 4  ;;  %s256_s9 = int_to_ptr.vmem [resolvable:$true] %s255_s9  ;;  %s1060_s30 = int_to_ptr.vmem [resolvable:$false] %s1059_s30 }
  0x41   : > { %s1054_s16 = scalar_lea.vmem %s256_s9, 128  ;;  %s1061_s14 = scalar_lea.vmem %s1060_s30, 256 }
  0x42   : > { %p1055_p8 = scmp.ne.s32.totalorder %s256_s9, %s1054_s16  ;;  %p1062_p9 = scmp.lt.s32.totalorder %s256_s9, %s1060_s30 }
  0x43   : > { %p1063_p6 = scmp.lt.s32.totalorder %s1061_s14, %s1054_s16 }
  0x44   : > { %p1057_p2 = pnand %p1055_p8, %p989_p0 }
  0x45   : > { %p1064_p10 = por %p1063_p6, %p1062_p9 }
  0x46   : > { %p1058_p3 = pneg %p1057_p2 }
  0x48   : > { %p1065_p11 = pnand %p1064_p10, %p1058_p3 }
  0x4a   : > { %1068 = shalt.err (!%p1065_p11)
}
  0x4b   : > { %884 = dma.hbm_to_vmem [thread:$0]  (!%p1256_p13), %s253_s0, 128, %s256_s9, %s1261_s13  }
  0x4c   : > { %264 = sbr.rel (%p1210_p5) target bundleno = 742 (0x2e6), region = 36 }
  0x51   : > { %1094 = dma.done.wait (%p1198_p1), [#allocation5], 256  }
  0x52   : > { %1096 = vsyncadd (%p1198_p1), [#allocation5], 4294967040 }
  0x53   : > { %1098 = dma.done.wait (%p1198_p1), [#allocation7], 256  }
  0x54   : > { %1100 = vsyncadd (%p1198_p1), [#allocation7], 4294967040  ;;  %s1399_s18 = sadd.s32 4294967295, %s1127_s23   ;;  %s276_s10 = sand.u32 1, %s1111_s19  }
  0x55   : > { %s274_s0 = sand.u32 1, %s1399_s18   ;;  %s826_s27 = sshll.u32 %s276_s10, 3 }
  0x56   : > { %s275_s13 = scalar_lea.sflag [#allocation5], %s274_s0  ;;  %s278_s11 = scalar_lea.vmem [#allocation8], %s826_s27 }
  0x57   : > { %1102 = dma.done.wait (%p1206_p4), %s275_s13, 256  }
  0x58   : > { %1104 = vsyncadd (%p1206_p4), %s275_s13, 4294967040  ;;  %s287_s15 = scalar_lea.vmem [#allocation9], %s826_s27  ;;  %vm349_vm0 = vcmask 261120   ;;  %v346_v1 = vld [vmem:[%s278_s11] sm:$0xff]  ;;  %v344_v6 = vld [vmem:[#allocation6] sm:$0xff]  ;;  %vm338_vm1 = vcmask 58368  }
  0x59   : > { %v347_v0 = vld [vmem:[%s287_s15] sm:$0xff]  ;;  %v348_v3 = vmul.f32 %v346_v1, %v346_v1  ;;  %854 = vmatprep.mubr.msk.f32.mxu1 %vm349_vm0, %v344_v6  ;;  %v342_v7 = vld [vmem:[#allocation4] sm:$0xff]  ;;  %v343_v17 = vld [vmem:[#allocation4 + $0x8] sm:$0x3]  ;;  %vm336_vm2 = vcmask 64512   ;;  %v1135_v18 = vmov 0.0  }
  0x5a   : > { %v356_v2 = vmul.f32 %v347_v0, %v347_v0  ;;  %849 = vmatprep.mubr.msk.f32.mxu0 %vm349_vm0, %v342_v7  ;;  %v345_v15 = vld [vmem:[#allocation6 + $0x8] sm:$0x3]  ;;  %337 = vst.msk [vmem:[#allocation2] sm:$0xff] %vm336_vm2, %v1135_v18  ;;  %340 = vst.msk [vmem:[#allocation3] sm:$0xff] %vm336_vm2, %v1135_v18  ;;  %s836_s25 = sshll.u32 %s1119_s21, 3  ;;  %p324_p1 = scmp.lt.s32.totalorder %s1119_s21, 1 }
  0x5b   : > { %v350_v5 = vsel %vm349_vm0, %v348_v3, 0.0  ;;  %339 = vst.msk [vmem:[#allocation2 + $0x8] sm:$0x3] %vm338_vm1, %v1135_v18  ;;  %341 = vst.msk [vmem:[#allocation3 + $0x8] sm:$0x3] %vm338_vm1, %v1135_v18  ;;  %vm670_vm6 = vcmask 1024  }
  0x5c   : > { %v357_v4 = vsel %vm349_vm0, %v356_v2, 0.0  ;;  %s1408_s21 = smov (!%p324_p1, %s1119_s21), 1  ;;  %vm668_vm7 = vcmask 7168   ;;  %vm658_vm8 = vcmask 0  }
  0x5d   : > { %358 = vadd.xlane.f32.xlu0 %v357_v4  ;;  %s840_s26 = sshll.u32 %s1408_s21, 4  ;;  %s326_s16 = scalar_lea.vmem %s1385_s4, %s1408_s21 }
  0x5e   : > { %s331_s12 = scalar_lea.vmem %s1386_s5, %s840_s26 }
  0x61   : > { %351 = vadd.xlane.f32.xlu0 %v350_v5 }
  0xe6   : > { %v359_v8 = vpop.xlane.xlu0 %358 }
  0xe7   : > { %v360_v9 = vmax.f32 %v359_v8, 1e-24 }
  0xe9   : > { %943 = vrsqrt.f32 %v360_v9 }
  0xea   : > { %v352_v10 = vpop.xlane.xlu0 %351 }
  0xeb   : > { %v353_v11 = vmax.f32 %v352_v10, 1e-24 }
  0xed   : > { %945 = vrsqrt.f32 %v353_v11 }
  0xf6   : > { %v944_v12 = vpop.eup %943 }
  0xf7   : > { %v362_v13 = vmul.f32 %v944_v12, %v347_v0 }
  0xf9   : > { %852 = vmatprep.subr.msk.mxu1 %vm349_vm0, %v362_v13 }
  0xfa   : > { %v946_v14 = vpop.eup %945  ;;  %853 = vmatpush3.xpose.msk.msra.mxu1 %vm349_vm0, %v362_v13 }
  0xfb   : > { %v355_v16 = vmul.f32 %v946_v14, %v346_v1 }
  0xfd   : > { %847 = vmatprep.subr.msk.mxu0 %vm349_vm0, %v355_v16  ;;  %855 = vmatmul.mubr.msk.f32.vlgmr.msra.gmra.mxu1 %vm349_vm0, %v345_v15 }
  0xfe   : > { %848 = vmatpush3.xpose.msk.msra.mxu0 %vm349_vm0, %v355_v16 }
 0x101   : > { %850 = vmatmul.mubr.msk.f32.vlgmr.msra.gmra.mxu0 %vm349_vm0, %v343_v17 }
 0x1bd   : > { %v856_v19 = vpop.f32.mrf.mxu1 }
 0x1be   : > { %v578_v21 = vsel %vm338_vm1, %v856_v19, -inf }
 0x1bf   : > { %v522_v20 = vpop.f32.mrf.mxu1 }
 0x1c0   : > { %v577_v22 = vsel %vm336_vm2, %v522_v20, -inf }
 0x1c1   : > { %v579_v23 = vmax.f32 %v577_v22, %v578_v21  ;;  %v851_v24 = vpop.f32.mrf.mxu0 }
 0x1c2   : > { %v534_v27 = vsel %vm338_vm1, %v851_v24, -inf }
 0x1c3   : > { %v580_v25 = vrot.slane %v579_v23, 4  ;;  %v438_v26 = vpop.f32.mrf.mxu0 }
 0x1c4   : > { %v532_v28 = vsel %vm336_vm2, %v438_v26, -inf }
 0x1c5   : > { %v581_v29 = vmax.f32 %v579_v23, %v580_v25  ;;  %v535_v30 = vmax.f32 %v532_v28, %v534_v27  ;;  %v616_v27 = vstv %s836_s25 }
 0x1c7   : > { %v582_v31 = vrot.slane %v581_v29, 2  ;;  %v536_v32 = vrot.slane %v535_v30, 4 }
 0x1c9   : > { %v583_v33 = vmax.f32 %v581_v29, %v582_v31  ;;  %v537_v34 = vmax.f32 %v535_v30, %v536_v32 }
 0x1cb   : > { %v584_v35 = vrot.slane %v583_v33, 1  ;;  %v538_v36 = vrot.slane %v537_v34, 2 }
 0x1cd   : > { %v585_v37 = vmax.f32 %v583_v33, %v584_v35  ;;  %v539_v38 = vmax.f32 %v537_v34, %v538_v36 }
 0x1cf   : > { %v586_v39 = vsub.f32 %v522_v20, %v585_v37  ;;  %v587_v40 = vsub.f32 %v856_v19, %v585_v37  ;;  %v540_v41 = vrot.slane %v539_v38, 1 }
 0x1d1   : > { %v588_v42 = vmul.f32 1.442695, %v586_v39  ;;  %v590_v43 = vmul.f32 1.442695, %v587_v40  ;;  %v541_v44 = vmax.f32 %v539_v38, %v540_v41 }
 0x1d3   : > { %947 = vpow2.f32 %v588_v42  ;;  %v1331_v45 = vsub.f32 %v438_v26, %v541_v44  ;;  %v1333_v46 = vsub.f32 %v851_v24, %v541_v44  ;;  %v614_v24 = vlaneseq  ;;  %v631_v44 = vld [vmem:[#allocation3] sm:$0xff] }
 0x1d4   : > { %949 = vpow2.f32 %v590_v43 }
 0x1d5   : > { %v544_v47 = vmul.f32 1.442695, %v1331_v45  ;;  %v546_v48 = vmul.f32 1.442695, %v1333_v46  ;;  %v615_v26 = vand.u32 127, %v614_v24 }
 0x1d7   : > { %951 = vpow2.f32 %v544_v47  ;;  %v617_v28 = vadd.s32 %v616_v27, %v615_v26  ;;  %v632_v47 = vld [vmem:[#allocation3 + $0x8] sm:$0x3] }
 0x1d8   : > { %953 = vpow2.f32 %v546_v48  ;;  %v621_v48 = vld [vmem:[#allocation2] sm:$0xff] }
 0x1d9   : > { %vm618_vm3 = vcmp.lt.s32.totalorder %v617_v28, 16 }
 0x1da   : > { %v837_v34 = vsel %vm618_vm3, 1.0, %v1135_v18 }
 0x1e0   : > { %v948_v49 = vpop.eup %947 }
 0x1e1   : > { %v950_v50 = vpop.eup %949  ;;  %v592_v51 = vmul.f32 %v948_v49, %v948_v49  ;;  %v622_v49 = vld [vmem:[#allocation2 + $0x8] sm:$0x3] }
 0x1e2   : > { %v593_v52 = vmul.f32 %v950_v50, %v950_v50 }
 0x1e3   : > { %v594_v53 = vmul.f32 %v592_v51, %v592_v51 }
 0x1e4   : > { %v952_v54 = vpop.eup %951  ;;  %v595_v55 = vmul.f32 %v593_v52, %v593_v52 }
 0x1e5   : > { %v954_v56 = vpop.eup %953  ;;  %v596_v57 = vsel %vm336_vm2, %v594_v53, 0.0  ;;  %v548_v58 = vsel %vm336_vm2, %v952_v54, 0.0  ;;  %v561_v59 = vmul.f32 %v952_v54, %v952_v54 }
 0x1e6   : > { %v597_v60 = vsel %vm338_vm1, %v595_v55, 0.0  ;;  %v549_v61 = vsel %vm338_vm1, %v954_v56, 0.0  ;;  %v562_v62 = vmul.f32 %v954_v56, %v954_v56 }
 0x1e7   : > { %v598_v63 = vadd.f32 %v597_v60, %v596_v57  ;;  %v550_v0 = vadd.f32 %v549_v61, %v548_v58  ;;  %v563_v1 = vmul.f32 %v561_v59, %v561_v59 }
 0x1e8   : > { %v564_v2 = vmul.f32 %v562_v62, %v562_v62 }
 0x1e9   : > { %v599_v3 = vrot.slane %v598_v63, 4  ;;  %v551_v4 = vrot.slane %v550_v0, 4  ;;  %v565_v5 = vsel %vm336_vm2, %v563_v1, 0.0 }
 0x1ea   : > { %v566_v6 = vsel %vm338_vm1, %v564_v2, 0.0 }
 0x1eb   : > { %v600_v7 = vadd.f32 %v599_v3, %v598_v63  ;;  %v552_v8 = vadd.f32 %v551_v4, %v550_v0  ;;  %v567_v9 = vadd.f32 %v566_v6, %v565_v5 }
 0x1ed   : > { %v601_v10 = vrot.slane %v600_v7, 2  ;;  %v553_v11 = vrot.slane %v552_v8, 2  ;;  %v568_v12 = vrot.slane %v567_v9, 4 }
 0x1ef   : > { %v602_v13 = vadd.f32 %v601_v10, %v600_v7  ;;  %v554_v14 = vadd.f32 %v553_v11, %v552_v8  ;;  %v569_v15 = vadd.f32 %v568_v12, %v567_v9 }
 0x1f1   : > { %v603_v16 = vrot.slane %v602_v13, 1  ;;  %v555_v17 = vrot.slane %v554_v14, 1  ;;  %v570_v19 = vrot.slane %v569_v15, 2 }
 0x1f3   : > { %v604_v20 = vadd.f32 %v603_v16, %v602_v13  ;;  %v556_v21 = vadd.f32 %v555_v17, %v554_v14  ;;  %v571_v22 = vadd.f32 %v570_v19, %v569_v15 }
 0x1f5   : > { %955 = vrcp.f32 %v604_v20  ;;  %v572_v23 = vrot.slane %v571_v22, 1 }
 0x1f6   : > { %957 = vlog2.f32 %v556_v21 }
 0x1f7   : > { %v573_v25 = vadd.f32 %v572_v23, %v571_v22 }
 0x1f9   : > { %959 = vrcp.f32 %v573_v25 }
 0x202   : > { %v956_v29 = vpop.eup %955 }
 0x203   : > { %v958_v30 = vpop.eup %957  ;;  %v606_v31 = vmul.f32 %v956_v29, %v594_v53  ;;  %v607_v32 = vmul.f32 %v956_v29, %v595_v55 }
 0x204   : > { %v558_v33 = vmul.f32 0.6931472, %v958_v30 }
 0x205   : > { %vm608_vm4 = vcmp.lt.f32.partialorder %v606_v31, 0.0001  ;;  %vm609_vm5 = vcmp.lt.f32.partialorder %v607_v32, 0.0001 }
 0x206   : > { %v960_v35 = vpop.eup %959  ;;  %v559_v36 = vsub.f32 %v1331_v45, %v558_v33  ;;  %v560_v37 = vsub.f32 %v1333_v46, %v558_v33  ;;  %v610_v38 = vsel %vm608_vm4, 0.0, %v606_v31  ;;  %v611_v39 = vsel %vm609_vm5, 0.0, %v607_v32 }
 0x207   : > { %v575_v40 = vmul.f32 %v960_v35, %v563_v1  ;;  %v576_v41 = vmul.f32 %v960_v35, %v564_v2 }
 0x208   : > { %v623_v42 = vmul.f32 %v610_v38, %v559_v36  ;;  %v624_v43 = vmul.f32 %v611_v39, %v560_v37 }
 0x209   : > { %v633_v50 = vmul.f32 %v837_v34, %v575_v40  ;;  %v634_v51 = vmul.f32 %v837_v34, %v576_v41 }
 0x20a   : > { %v625_v52 = vmul.f32 %v837_v34, %v623_v42  ;;  %v626_v53 = vmul.f32 %v837_v34, %v624_v43 }
 0x20b   : > { %v635_v18 = vadd.f32 %v633_v50, %v631_v44  ;;  %v636_v54 = vadd.f32 %v634_v51, %v632_v47 }
 0x20c   : > { %v627_v55 = vadd.f32 %v625_v52, %v621_v48  ;;  %v628_v45 = vadd.f32 %v626_v53, %v622_v49 }
 0x20d   : > { %637 = vst.msk [vmem:[#allocation3] sm:$0xff] %vm336_vm2, %v635_v18 }
 0x20e   : > { %638 = vst.msk [vmem:[#allocation3 + $0x8] sm:$0x3] %vm338_vm1, %v636_v54  ;;  %630 = vst.msk [vmem:[#allocation2 + $0x8] sm:$0x3] %vm338_vm1, %v628_v45 }
 0x20f   : > { %629 = vst.msk [vmem:[#allocation2] sm:$0xff] %vm336_vm2, %v627_v55 }
 0x214   : > { %v660_v62 = vld [vmem:[#allocation3] sm:$0xff] }
 0x215   : > { %v661_v46 = vld [vmem:[#allocation3 + $0x8] sm:$0x3]  ;;  %v643_v58 = vld [vmem:[#allocation2 + $0x8] sm:$0x3]  ;;  %v662_v63 = vsel %vm336_vm2, %v660_v62, 0.0 }
 0x216   : > { %v665_v56 = vsel %vm338_vm1, %v661_v46, 0.0  ;;  %v642_v57 = vld [vmem:[#allocation2] sm:$0xff]  ;;  %v645_v60 = vsel %vm338_vm1, %v643_v58, 0.0 }
 0x217   : > { %666 = vadd.xlane.f32.xlu0 %v665_v56  ;;  %v644_v59 = vsel %vm336_vm2, %v642_v57, 0.0 }
 0x218   : > { %v646_v61 = vadd.f32 %v645_v60, %v644_v59 }
 0x21a   : > { %647 = vadd.xlane.f32.xlu1 %v646_v61 }
 0x21e   : > { %663 = vadd.xlane.f32.xlu1 %v662_v63 }
 0x2a0   : > { %v667_v0 = vpop.xlane.xlu0 %666 }
 0x2a1   : > { %671 = vst.msk [vmem:[%s331_s12 + $0x8] sm:$0x3] %vm670_vm6, %v667_v0 }
 0x2a3   : > { %v648_v1 = vpop.xlane.xlu1 %647 }
 0x2a4   : > { %v649_v2 = vrot.slane %v648_v1, 4 }
 0x2a6   : > { %v650_v3 = vadd.f32 %v649_v2, %v648_v1 }
 0x2a7   : > { %v664_v4 = vpop.xlane.xlu1 %663 }
 0x2a8   : > { %v651_v5 = vrot.slane %v650_v3, 2  ;;  %669 = vst.msk [vmem:[%s331_s12] sm:$0xff] %vm668_vm7, %v664_v4 }
 0x2aa   : > { %v652_v6 = vadd.f32 %v651_v5, %v650_v3 }
 0x2ac   : > { %v653_v7 = vrot.slane %v652_v6, 1 }
 0x2ae   : > { %v654_v8 = vadd.f32 %v653_v7, %v652_v6 }
 0x2b0   : > { %857 = vpush %v654_v8 }
 0x2e1   : > { %s858_s28 = spop %857 }
 0x2e2   : > { %s656_s29 = ssub.f32 0.0, %s858_s28 }
 0x2e4   : > { %v657_v9 = vstv %s656_s29 }
 0x2e5   : > { %659 = vst.msk [vmem:[%s326_s16] sm:$0x1] %vm658_vm8, %v657_v9 }
 0x2e6 PF: > { %s18_s23 = sadd.s32 1, %s1127_s23   ;;  %s1400_s18 = smov %s1111_s19 }
 0x2e7   : > { %p15_p4 = scmp.ge.s32.totalorder %s18_s23, 4   ;;  %s1401_s19 = smov %s1115_s20 }
 0x2e8   : > { %s1402_s20 = smov %s1249_s17  ;;  %s1403_s21 = smov %s1123_s22 }
 0x2e9   : > { %s1404_s22 = smov %s1406_s6  ;;  %17 = sbr.rel (!%p15_p4) target bundleno = 6 (0x6), region = 114 }
 0x2ee   :  { %705 = vsyncpa [#allocation5], 1 }
 0x2ef   :  { %707 = vsyncpa [#allocation5 + $0x1], 1 }
 0x2f0   :  { %708 = vsyncpa [#allocation7], 1 }

</bundles_post_ra>
